<compile_context>
chip_gen: v5e
topology: v5e:2x2
jax: 0.10.0
libtpu: 0.0.40
codegen_flags: <defaults>
</compile_context>

<pallas_src>
import jax
import jax.numpy as jnp
from jax.experimental import pallas as pl
from jax.experimental.pallas import tpu as pltpu


def _copy_kernel(x_ref, o_ref):
    # Elementwise identity copy (the new size-1 axis carries no data).
    o_ref[...] = x_ref[...]


def _choose_2d(total):
    """Pick a lane-dense (rows, cols) row-major factoring of `total`."""
    # Prefer a last dim that is a multiple of 128 (full vreg lanes, unmasked
    # vst, contiguous HBM DMA).  Cap at 1024 so per-tile VMEM stays small on
    # every TPU generation.
    for cols in (1024, 512, 256, 128):
        if total % cols == 0:
            return total // cols, cols
    # Awkward size: single row, full-array block (allowed by the (8,128) rule
    # because the block equals the full array dims).
    return 1, total


def _pallas_copy_2d(x2d):
    rows, cols = x2d.shape
    nbytes = x2d.size * x2d.dtype.itemsize

    # Row tile: 512 (multiple of 32 -> satisfies f32/bf16/int8 sublane packing)
    # when tiling is worthwhile; otherwise the full row extent, which is always
    # a legal block shape.
    tm = 512 if rows > 512 else rows
    grid_m = pl.cdiv(rows, tm)

    return pl.pallas_call(
        _copy_kernel,
        out_shape=jax.ShapeDtypeStruct((rows, cols), x2d.dtype),
        grid=(grid_m,),
        in_specs=[pl.BlockSpec((tm, cols), lambda i: (i, 0))],
        out_specs=pl.BlockSpec((tm, cols), lambda i: (i, 0)),
        # Identity copy: let the output reuse the input buffer instead of
        # allocating (and streaming) a second HBM array.
        input_output_aliases={0: 0},
        compiler_params=pltpu.CompilerParams(
            dimension_semantics=("parallel",),  # shard rows across TCs on v7x
        ),
        cost_estimate=pl.CostEstimate(
            flops=0, transcendentals=0, bytes_accessed=2 * nbytes
        ),
    )(x2d)


def unsqueeze(x, dim=-1):
    """Pallas-backed equivalent of torch.Tensor.unsqueeze(dim)."""
    ndim_out = x.ndim + 1
    # PyTorch semantics: dim may be in [-ndim_out, ndim_out - 1].
    if dim < 0:
        dim = dim + ndim_out
    assert 0 <= dim < ndim_out, "unsqueeze dim out of range"
    out_shape = x.shape[:dim] + (1,) + x.shape[dim:]

    total = 1
    for s in x.shape:
        total *= s
    if total == 0:
        # Empty tensor: nothing to copy, pure metadata reshape.
        return x.reshape(out_shape)

    # Row-major flatten to a lane-dense 2D slab (zero-cost metadata reshape),
    # in-kernel identity copy, then the (also zero-cost) unsqueeze reshape.
    rows, cols = _choose_2d(total)
    x2d = x.reshape(rows, cols)
    y2d = _pallas_copy_2d(x2d)
    return y2d.reshape(out_shape)


if __name__ == "__main__":
    key = jax.random.PRNGKey(0)
    x = jax.random.normal(key, (2, 4, 16, 16), dtype=jnp.float32)

    # Default module config: dim=-1
    y = unsqueeze(x, dim=-1)
    y = jax.block_until_ready(y)

    assert y.shape == (2, 4, 16, 16, 1), y.shape
    assert y.dtype == x.dtype
    assert bool(jnp.all(y[..., 0] == x))

    # Other dims against jnp.expand_dims semantics.
    for d in (0, 2, -3):
        yd = jax.block_until_ready(unsqueeze(x, dim=d))
        ref = jnp.expand_dims(x, d)
        assert yd.shape == ref.shape, (d, yd.shape, ref.shape)
        assert bool(jnp.all(yd == ref))

    # bf16 path (exercises the 16-row sublane packing via full-dim blocks).
    xb = x.astype(jnp.bfloat16)
    yb = jax.block_until_ready(unsqueeze(xb, dim=1))
    assert yb.shape == (2, 1, 4, 16, 16)
    assert yb.dtype == jnp.bfloat16
    assert bool(jnp.all(yb[:, 0] == xb))

    print("KERNEL_OK")
</pallas_src>

<mosaic_0001>
module attributes {stable_mosaic.version = 11 : i64} {
  func.func @_copy_kernel(%arg0: i32, %arg1: memref<2x1024xf32, #tpu.memory_space<vmem>>, %arg2: memref<2x1024xf32, #tpu.memory_space<vmem>>) attributes {dimension_semantics = [#tpu.dimension_semantics<parallel>], iteration_bounds = array<i64: 1>, scalar_prefetch = 0 : i64, scratch_operands = 0 : i64, tpu.core_type = #tpu.core_type<tc>, window_params = [{transform_indices = @transform_0, window_bounds = array<i64: 2, 1024>}, {transform_indices = @transform_1, window_bounds = array<i64: 2, 1024>}]} {
    %c0 = arith.constant 0 : index
    %c0_0 = arith.constant 0 : index
    %0 = vector.load %arg1[%c0, %c0_0] : memref<2x1024xf32, #tpu.memory_space<vmem>>, vector<2x1024xf32>
    %c0_1 = arith.constant 0 : index
    %c0_2 = arith.constant 0 : index
    %1 = vector.load %arg2[%c0_1, %c0_2] : memref<2x1024xf32, #tpu.memory_space<vmem>>, vector<2x1024xf32>
    tpu.vector_store %arg2[%c0_1, %c0_2], %0 {strides = array<i32>} : memref<2x1024xf32, #tpu.memory_space<vmem>>, vector<2x1024xf32>,
    return
  }
  func.func @transform_0(%arg0: i32) -> (i32, i32) {
    %c0_i32 = arith.constant 0 : i32
    %c0_i32_0 = arith.constant 0 : i32
    return %arg0, %c0_i32 : i32, i32
  }
  func.func @transform_1(%arg0: i32) -> (i32, i32) {
    %c0_i32 = arith.constant 0 : i32
    %c0_i32_0 = arith.constant 0 : i32
    return %arg0, %c0_i32 : i32, i32
  }
}

</mosaic_0001>

<bundles_post_ra>
// kernel: tpu_custom_call.1
= control target key start
LH: loop header
LB: loop body
LE: loop exit
PB: predicated region body
PF: predicated region fallthrough
CT: control target
= control target key end

     0   :  { %6 = vsyncpa [#allocation3], 0  ;;  %s116_s0 = inlined_call_operand.hbm [shape: f32[2,1024], index: 0, kind: input, shape index: {}, may-alias: {0,1}]   ;;  %s117_s1 = inlined_call_operand.hbm [shape: f32[2,1024], index: 1, kind: output, shape index: {}, may-alias: {0,1}]  }
   0x1   :  { %7 = vsyncpa [#allocation4], 0  ;;  %s13_s8 = sshll.u32 %s116_s0, 4  ;;  %s98_s9 = smov [#allocation2]   ;;  %s14_s8 = int_to_ptr.hbm [resolvable:$true] %s13_s8 }
   0x2   :  { %s15_s10 = sshll.u32 %s98_s9, 4  ;;  %s16_s10 = int_to_ptr.vmem [resolvable:$true] %s15_s10 }
   0x3   :  { %18 = dma.hbm_to_vmem [thread:$0]  %s14_s8, 256, %s16_s10, [#allocation3]  }
   0x4   :  { %94 = dma.done.wait [#allocation3], 256  }
   0x5   :  { %95 = vsyncadd [#allocation3], 4294967040  ;;  %s99_s11 = smov [#allocation5]   ;;  %s34_s15 = sshll.u32 %s117_s1, 4  ;;  %v23_v0 = vld [vmem:[#allocation2] sm:$0xff]  ;;  %v24_v1 = vld [vmem:[#allocation2 + $0x8] sm:$0xff]  ;;  %s35_s15 = int_to_ptr.hbm [resolvable:$true] %s34_s15 }
   0x6   :  { %s32_s12 = sshll.u32 %s99_s11, 4  ;;  %25 = vst [vmem:[#allocation5] sm:$0xff] %v23_v0  ;;  %s33_s12 = int_to_ptr.vmem [resolvable:$true] %s32_s12 }
   0x7   :  { %26 = vst [vmem:[#allocation5 + $0x8] sm:$0xff] %v24_v1 }
   0x8   :  { %37 = dma.vmem_to_hbm [thread:$0]  %s33_s12, 256, %s35_s15, [#allocation4]  }
   0x9   :  { %96 = dma.done.wait [#allocation4], 256  }
   0xa   :  { %97 = vsyncadd [#allocation4], 4294967040 }
   0xb   :  { %42 = vsyncpa [#allocation3], 1 }
   0xc   :  { %43 = vsyncpa [#allocation4], 1 }

</bundles_post_ra>
